<compile_context>
chip_gen: v7x
topology: tpu7x:2x2x1
jax: 0.10.0
libtpu: 0.0.40
codegen_flags: <defaults>
</compile_context>

<pallas_src>
import functools

import jax
import jax.numpy as jnp
from jax.experimental import pallas as pl
from jax.experimental.pallas import tpu as pltpu


# ---------------------------------------------------------------------------
# Kernel A: batched LSTM1 input projection over all T frames.
#   xp1 = X_all @ Wx1 + (bx1 + bh1)        X_all: (T, F) bf16, Wx1: (F, 4H) bf16
# K-blocked with the f32 output block resident across the reduction axis.
# ---------------------------------------------------------------------------
def i2h_projection_kernel(x_ref, w_ref, b_ref, out_ref):
    k = pl.program_id(0)

    @pl.when(k == 0)
    def _():
        out_ref[...] = jnp.zeros_like(out_ref)

    out_ref[...] += jnp.dot(x_ref[...], w_ref[...],
                            preferred_element_type=jnp.float32)

    @pl.when(k == pl.num_programs(0) - 1)
    def _():
        out_ref[...] += b_ref[...]


def _pick_k_tile(K):
    for cand in (512, 256, 128):
        if K % cand == 0:
            return cand
    return K


def i2h_projection(x_bf16, w_bf16, bias_f32):
    T, K = x_bf16.shape
    _, G = w_bf16.shape
    tk = _pick_k_tile(K)
    return pl.pallas_call(
        i2h_projection_kernel,
        out_shape=jax.ShapeDtypeStruct((T, G), jnp.float32),
        grid=(K // tk,),
        in_specs=[
            pl.BlockSpec((T, tk), lambda k: (0, k)),
            pl.BlockSpec((tk, G), lambda k: (k, 0)),
            pl.BlockSpec((1, G), lambda k: (0, 0)),
        ],
        out_specs=pl.BlockSpec((T, G), lambda k: (0, 0)),
        compiler_params=pltpu.CompilerParams(
            dimension_semantics=("arbitrary",)),
    )(x_bf16, w_bf16, bias_f32)


# ---------------------------------------------------------------------------
# Kernel B: the recurrence.  One grid step == one frame (one torch forward call).
# Weights are grid-invariant (resident in VMEM); c/h state lives in VMEM scratch.
# ---------------------------------------------------------------------------
def lstm_stack_kernel(num_classes,
                      xp1_ref, wh1_ref, wx2_ref, wh2_ref, b2_ref,
                      wfc_ref, bfc_ref, state0_ref,
                      logp_ref, state_out_ref,
                      c1_s, h1_s, c2_s, h2_s):
    t = pl.program_id(0)
    H1 = wh1_ref.shape[0]
    H2 = wh2_ref.shape[0]

    # Load the initial (c1, h1, c2, h2) state into scratch at the first step.
    @pl.when(t == 0)
    def _():
        c1_s[...] = state0_ref[0:1, :]
        h1_s[...] = state0_ref[1:2, :]
        c2_s[...] = state0_ref[2:3, :]
        h2_s[...] = state0_ref[3:4, :]

    # ---- LSTM cell 1: input projection precomputed (includes bx1 + bh1) ----
    pre1 = xp1_ref[0] + jnp.dot(h1_s[...], wh1_ref[...],
                                preferred_element_type=jnp.float32)
    sig1 = jax.nn.sigmoid(pre1)          # whole-vreg EUP
    th1 = jnp.tanh(pre1)                 # whole-vreg EUP
    i1 = sig1[:, 0 * H1:1 * H1]
    f1 = sig1[:, 1 * H1:2 * H1]
    g1 = th1[:, 2 * H1:3 * H1]
    o1 = sig1[:, 3 * H1:4 * H1]
    c1 = f1 * c1_s[...] + i1 * g1
    h1 = o1 * jnp.tanh(c1)
    c1_s[...] = c1
    h1_s[...] = h1

    # ---- LSTM cell 2 (input is h1 of cell 1, biases folded into b2) ----
    pre2 = (jnp.dot(h1, wx2_ref[...], preferred_element_type=jnp.float32)
            + jnp.dot(h2_s[...], wh2_ref[...],
                      preferred_element_type=jnp.float32)
            + b2_ref[...])
    sig2 = jax.nn.sigmoid(pre2)
    th2 = jnp.tanh(pre2)
    i2 = sig2[:, 0 * H2:1 * H2]
    f2 = sig2[:, 1 * H2:2 * H2]
    g2 = th2[:, 2 * H2:3 * H2]
    o2 = sig2[:, 3 * H2:4 * H2]
    c2 = f2 * c2_s[...] + i2 * g2
    h2 = o2 * jnp.tanh(c2)
    c2_s[...] = c2
    h2_s[...] = h2

    # ---- fc + log_softmax (classes padded to the 128-lane width, masked) ----
    logits = (jnp.dot(h2, wfc_ref[...], preferred_element_type=jnp.float32)
              + bfc_ref[...])
    lane = jax.lax.broadcasted_iota(jnp.int32, logits.shape, 1)
    logits = jnp.where(lane < num_classes, logits,
                       jnp.full_like(logits, -1e30))
    m = jnp.max(logits, axis=-1, keepdims=True)
    z = logits - m
    lse = jnp.log(jnp.sum(jnp.exp(z), axis=-1, keepdims=True))
    logp_ref[0] = z - lse

    # Final state written once, at the last step (resident output block).
    @pl.when(t == pl.num_programs(0) - 1)
    def _():
        state_out_ref[0:1, :] = c1
        state_out_ref[1:2, :] = h1
        state_out_ref[2:3, :] = c2
        state_out_ref[3:4, :] = h2


# ---------------------------------------------------------------------------
# Wrapper: mirrors T successive VGG16LSTM.forward calls (after the CNN).
# ---------------------------------------------------------------------------
def vgg16_lstm_head_forward(conv_feats, params, state1, state2, *,
                            hidden_size, num_classes):
    T = conv_feats.shape[0]
    H = hidden_size
    G = 4 * H
    NP = params["wfc"].shape[1]          # classes padded to lane width

    if state1 is None:
        z = jnp.zeros((1, H), jnp.float32)
        state1 = (z, z)
    if state2 is None:
        z = jnp.zeros((1, H), jnp.float32)
        state2 = (z, z)

    # Flatten each frame (torch: x.view(1, -1)) and feed the big matmul in bf16.
    x_flat = conv_feats.reshape(T, -1).astype(jnp.bfloat16)

    # Hoisted i2h projection of LSTM1 over all T frames (one batched MXU matmul).
    xp1 = i2h_projection(x_flat, params["wx1"], params["b1"])      # (T, 4H) f32

    state0 = jnp.concatenate(
        [state1[0], state1[1], state2[0], state2[1]], axis=0
    ).astype(jnp.float32)                                          # (4, H)

    kernel = functools.partial(lstm_stack_kernel, num_classes)
    logp_pad, state_out = pl.pallas_call(
        kernel,
        out_shape=(jax.ShapeDtypeStruct((T, 1, NP), jnp.float32),
                   jax.ShapeDtypeStruct((4, H), jnp.float32)),
        grid=(T,),
        in_specs=[
            pl.BlockSpec((1, 1, G), lambda t: (t, 0, 0)),   # xp1 per-step block
            pl.BlockSpec((H, G), lambda t: (0, 0)),         # wh1  (resident)
            pl.BlockSpec((H, G), lambda t: (0, 0)),         # wx2  (resident)
            pl.BlockSpec((H, G), lambda t: (0, 0)),         # wh2  (resident)
            pl.BlockSpec((1, G), lambda t: (0, 0)),         # b2   (resident)
            pl.BlockSpec((H, NP), lambda t: (0, 0)),        # wfc  (resident)
            pl.BlockSpec((1, NP), lambda t: (0, 0)),        # bfc  (resident)
            pl.BlockSpec((4, H), lambda t: (0, 0)),         # initial state
        ],
        out_specs=(
            pl.BlockSpec((1, 1, NP), lambda t: (t, 0, 0)),  # per-step log_softmax
            pl.BlockSpec((4, H), lambda t: (0, 0)),         # final packed state
        ),
        scratch_shapes=[pltpu.VMEM((1, H), jnp.float32) for _ in range(4)],
        compiler_params=pltpu.CompilerParams(
            dimension_semantics=("arbitrary",)),
    )(xp1.reshape(T, 1, G), params["wh1"], params["wx2"], params["wh2"],
      params["b2"], params["wfc"], params["bfc"], state0)

    logp = logp_pad.reshape(T, NP)[:, :num_classes]
    next_state1 = (state_out[0:1, :], state_out[1:2, :])
    next_state2 = (state_out[2:3, :], state_out[3:4, :])
    return next_state1, next_state2, logp


# ---------------------------------------------------------------------------
# Parameter init (torch nn.Linear default bounds), stored pre-transposed.
# ---------------------------------------------------------------------------
def init_params(key, flatten_dim, hidden_size, num_classes, lanes=128):
    H = hidden_size
    G = 4 * H
    NP = ((num_classes + lanes - 1) // lanes) * lanes
    ks = jax.random.split(key, 10)

    def unif(k, shape, fan_in):
        b = 1.0 / (fan_in ** 0.5)
        return jax.random.uniform(k, shape, jnp.float32, -b, b)

    wx1 = unif(ks[0], (flatten_dim, G), flatten_dim)
    bx1 = unif(ks[1], (1, G), flatten_dim)
    wh1 = unif(ks[2], (H, G), H)
    bh1 = unif(ks[3], (1, G), H)
    wx2 = unif(ks[4], (H, G), H)
    bx2 = unif(ks[5], (1, G), H)
    wh2 = unif(ks[6], (H, G), H)
    bh2 = unif(ks[7], (1, G), H)
    wfc = unif(ks[8], (H, num_classes), H)
    bfc = unif(ks[9], (1, num_classes), H)

    return {
        "wx1": wx1.astype(jnp.bfloat16),   # big i2h weight: bf16 MXU + halved DMA
        "b1": bx1 + bh1,                   # i2h + h2h biases folded
        "wh1": wh1,
        "wx2": wx2,
        "wh2": wh2,
        "b2": bx2 + bh2,
        "wfc": jnp.zeros((H, NP), jnp.float32).at[:, :num_classes].set(wfc),
        "bfc": jnp.zeros((1, NP), jnp.float32).at[:, :num_classes].set(bfc),
    }


# ---------------------------------------------------------------------------
# Pure-JAX reference (same math as the torch module, same bf16 rounding of x/wx1).
# ---------------------------------------------------------------------------
def reference_forward(conv_feats, params, state1, state2, *,
                      hidden_size, num_classes):
    T = conv_feats.shape[0]
    H = hidden_size
    if state1 is None:
        z = jnp.zeros((1, H), jnp.float32)
        state1 = (z, z)
    if state2 is None:
        z = jnp.zeros((1, H), jnp.float32)
        state2 = (z, z)
    c1, h1 = state1
    c2, h2 = state2

    hi = jax.lax.Precision.HIGHEST
    x_all = conv_feats.reshape(T, -1).astype(jnp.bfloat16).astype(jnp.float32)
    wx1 = params["wx1"].astype(jnp.float32)
    wfc = params["wfc"][:, :num_classes]
    bfc = params["bfc"][:, :num_classes]

    def cell(pre, c):
        i, f, g, o = jnp.split(pre, 4, axis=1)
        i, f, g, o = (jax.nn.sigmoid(i), jax.nn.sigmoid(f),
                      jnp.tanh(g), jax.nn.sigmoid(o))
        c_n = f * c + i * g
        h_n = o * jnp.tanh(c_n)
        return c_n, h_n

    logps = []
    for t in range(T):
        x = x_all[t:t + 1]
        pre1 = (jnp.dot(x, wx1, precision=hi) + params["b1"]
                + jnp.dot(h1, params["wh1"], precision=hi))
        c1, h1 = cell(pre1, c1)
        pre2 = (jnp.dot(h1, params["wx2"], precision=hi) + params["b2"]
                + jnp.dot(h2, params["wh2"], precision=hi))
        c2, h2 = cell(pre2, c2)
        logits = jnp.dot(h2, wfc, precision=hi) + bfc
        logps.append(jax.nn.log_softmax(logits, axis=1))
    return (c1, h1), (c2, h2), jnp.concatenate(logps, axis=0)


if __name__ == "__main__":
    # Small shapes consistent with the module structure: T frames of CNN features.
    T = 8
    C, Hs, Ws = 4, 16, 16
    flatten_dim = C * Hs * Ws          # 1024
    hidden_size = 32                   # (real model: 512*7*7 -> 256)
    num_classes = 99

    key = jax.random.PRNGKey(0)
    k_x, k_p, k_s = jax.random.split(key, 3)

    conv_feats = jax.random.normal(k_x, (T, C, Hs, Ws), dtype=jnp.float32)
    params = init_params(k_p, flatten_dim, hidden_size, num_classes)

    # Path 1: default zero state (cur_state=None in the torch module).
    s1a, s2a, logp_a = vgg16_lstm_head_forward(
        conv_feats, params, None, None,
        hidden_size=hidden_size, num_classes=num_classes)

    # Path 2: provided recurrent state.
    kc1, kh1, kc2, kh2 = jax.random.split(k_s, 4)
    state1 = (jax.random.normal(kc1, (1, hidden_size), jnp.float32),
              jax.random.normal(kh1, (1, hidden_size), jnp.float32))
    state2 = (jax.random.normal(kc2, (1, hidden_size), jnp.float32),
              jax.random.normal(kh2, (1, hidden_size), jnp.float32))
    s1b, s2b, logp_b = vgg16_lstm_head_forward(
        conv_feats, params, state1, state2,
        hidden_size=hidden_size, num_classes=num_classes)

    jax.block_until_ready((s1a, s2a, logp_a, s1b, s2b, logp_b))

    # Sanity check against the pure-JAX reference.
    r1a, r2a, rlogp_a = reference_forward(
        conv_feats, params, None, None,
        hidden_size=hidden_size, num_classes=num_classes)
    r1b, r2b, rlogp_b = reference_forward(
        conv_feats, params, state1, state2,
        hidden_size=hidden_size, num_classes=num_classes)

    def check(got, want):
        assert jnp.allclose(got, want, atol=1e-3, rtol=1e-3), (
            float(jnp.max(jnp.abs(got - want))))

    for got, want in [(logp_a, rlogp_a), (logp_b, rlogp_b),
                      (s1a[0], r1a[0]), (s1a[1], r1a[1]),
                      (s2a[0], r2a[0]), (s2a[1], r2a[1]),
                      (s1b[0], r1b[0]), (s1b[1], r1b[1]),
                      (s2b[0], r2b[0]), (s2b[1], r2b[1])]:
        check(got, want)

    print("KERNEL_OK")
</pallas_src>

<mosaic_0001>
module attributes {stable_mosaic.version = 11 : i64} {
  func.func @i2h_projection_kernel(%arg0: i32, %arg1: memref<8x512xbf16, #tpu.memory_space<vmem>>, %arg2: memref<512x128xbf16, #tpu.memory_space<vmem>>, %arg3: memref<1x128xf32, #tpu.memory_space<vmem>>, %arg4: memref<8x128xf32, #tpu.memory_space<vmem>>) attributes {dimension_semantics = [#tpu.dimension_semantics<arbitrary>], iteration_bounds = array<i64: 2>, scalar_prefetch = 0 : i64, scratch_operands = 0 : i64, tpu.core_type = #tpu.core_type<tc>, window_params = [{transform_indices = @transform_0, window_bounds = array<i64: 8, 512>}, {transform_indices = @transform_1, window_bounds = array<i64: 512, 128>}, {pipeline_mode = #tpu.pipeline_mode<synchronous>, transform_indices = @transform_2, window_bounds = array<i64: 1, 128>}, {pipeline_mode = #tpu.pipeline_mode<synchronous>, transform_indices = @transform_3, window_bounds = array<i64: 8, 128>}]} {
    %c0_i32 = arith.constant 0 : i32
    %0 = arith.cmpi eq, %arg0, %c0_i32 : i32
    %1 = arith.extui %0 : i1 to i32
    %c0_i32_0 = arith.constant 0 : i32
    %2 = arith.cmpi ne, %1, %c0_i32_0 : i32
    scf.if %2 {
      %cst_9 = arith.constant 0.000000e+00 : f32
      %12 = vector.broadcast %cst_9 : f32 to vector<8x128xf32>
      %c0_10 = arith.constant 0 : index
      %c0_11 = arith.constant 0 : index
      %13 = vector.load %arg4[%c0_10, %c0_11] : memref<8x128xf32, #tpu.memory_space<vmem>>, vector<8x128xf32>
      tpu.vector_store %arg4[%c0_10, %c0_11], %12 {strides = array<i32>} : memref<8x128xf32, #tpu.memory_space<vmem>>, vector<8x128xf32>,
    } else {
    }
    %c0 = arith.constant 0 : index
    %c0_1 = arith.constant 0 : index
    %3 = vector.load %arg4[%c0, %c0_1] : memref<8x128xf32, #tpu.memory_space<vmem>>, vector<8x128xf32>
    %c0_2 = arith.constant 0 : index
    %c0_3 = arith.constant 0 : index
    %4 = vector.load %arg1[%c0_2, %c0_3] : memref<8x512xbf16, #tpu.memory_space<vmem>>, vector<8x512xbf16>
    %c0_4 = arith.constant 0 : index
    %c0_5 = arith.constant 0 : index
    %5 = vector.load %arg2[%c0_4, %c0_5] : memref<512x128xbf16, #tpu.memory_space<vmem>>, vector<512x128xbf16>
    %cst = arith.constant dense<0.000000e+00> : vector<8x128xf32>
    %6 = tpu.matmul %4, %5, %cst {dimension_numbers = #tpu.dot_dimension_numbers<[1], [0], [0], [1], [0, 0, 1, 1], [], []>} : vector<8x512xbf16>, vector<512x128xbf16>, vector<8x128xf32> -> vector<8x128xf32>
    %7 = arith.addf %3, %6 : vector<8x128xf32>
    %c0_6 = arith.constant 0 : index
    %c0_7 = arith.constant 0 : index
    %8 = vector.load %arg4[%c0_6, %c0_7] : memref<8x128xf32, #tpu.memory_space<vmem>>, vector<8x128xf32>
    tpu.vector_store %arg4[%c0_6, %c0_7], %7 {strides = array<i32>} : memref<8x128xf32, #tpu.memory_space<vmem>>, vector<8x128xf32>,
    %c1_i32 = arith.constant 1 : i32
    %9 = arith.cmpi eq, %arg0, %c1_i32 : i32
    %10 = arith.extui %9 : i1 to i32
    %c0_i32_8 = arith.constant 0 : i32
    %11 = arith.cmpi ne, %10, %c0_i32_8 : i32
    scf.if %11 {
      %c0_9 = arith.constant 0 : index
      %c0_10 = arith.constant 0 : index
      %12 = vector.load %arg4[%c0_9, %c0_10] : memref<8x128xf32, #tpu.memory_space<vmem>>, vector<8x128xf32>
      %c0_11 = arith.constant 0 : index
      %c0_12 = arith.constant 0 : index
      %13 = vector.load %arg3[%c0_11, %c0_12] : memref<1x128xf32, #tpu.memory_space<vmem>>, vector<1x128xf32>
      %14 = vector.broadcast %13 : vector<1x128xf32> to vector<8x128xf32>
      %15 = arith.addf %12, %14 : vector<8x128xf32>
      %c0_13 = arith.constant 0 : index
      %c0_14 = arith.constant 0 : index
      %16 = vector.load %arg4[%c0_13, %c0_14] : memref<8x128xf32, #tpu.memory_space<vmem>>, vector<8x128xf32>
      tpu.vector_store %arg4[%c0_13, %c0_14], %15 {strides = array<i32>} : memref<8x128xf32, #tpu.memory_space<vmem>>, vector<8x128xf32>,
    } else {
    }
    return
  }
  func.func @transform_0(%arg0: i32) -> (i32, i32) {
    %c0_i32 = arith.constant 0 : i32
    %c0_i32_0 = arith.constant 0 : i32
    return %c0_i32, %arg0 : i32, i32
  }
  func.func @transform_1(%arg0: i32) -> (i32, i32) {
    %c0_i32 = arith.constant 0 : i32
    %c0_i32_0 = arith.constant 0 : i32
    return %arg0, %c0_i32 : i32, i32
  }
  func.func @transform_2(%arg0: i32) -> (i32, i32) {
    %c0_i32 = arith.constant 0 : i32
    %c0_i32_0 = arith.constant 0 : i32
    %c0_i32_1 = arith.constant 0 : i32
    return %c0_i32, %c0_i32_0 : i32, i32
  }
  func.func @transform_3(%arg0: i32) -> (i32, i32) {
    %c0_i32 = arith.constant 0 : i32
    %c0_i32_0 = arith.constant 0 : i32
    %c0_i32_1 = arith.constant 0 : i32
    return %c0_i32, %c0_i32_0 : i32, i32
  }
}

</mosaic_0001>

<bundles_post_ra>
// kernel: tpu_custom_call.1
= control target key start
LH: loop header
LB: loop body
LE: loop exit
PB: predicated region body
PF: predicated region fallthrough
CT: control target
= control target key end

     0   :  { %8 = vsyncpa [#allocation3], 0  ;;  %s1236_s0 = inlined_call_operand.hbm [shape: bf16[8,1024], index: 0, kind: input, shape index: {}]   ;;  %s1237_s1 = inlined_call_operand.hbm [shape: bf16[1024,128], index: 1, kind: input, shape index: {}]   ;;  %s1238_s2 = inlined_call_operand.vmem [shape: f32[1,128], index: 2, kind: input, shape index: {}]   ;;  %s1239_s3 = inlined_call_operand.hbm [shape: f32[8,128], index: 3, kind: output, shape index: {}]  }
   0x1   :  { %10 = vsyncpa [#allocation3 + $0x1], 0 }
   0x2   :  { %11 = vsyncpa [#allocation6], 0 }
   0x3   :  { %13 = vsyncpa [#allocation6 + $0x1], 0 }
   0x4   :  { %14 = vsyncpa [#allocation4], 0  ;;  %s1019_s12 = smov 0   ;;  %s1021_s13 = smov 0  }
   0x5   :  { %s1023_s14 = smov 0   ;;  %s1025_s15 = smov 0  }
   0x6 LB: > { %s1038_s16 = sadd.s32 4294967295, %s991_s15   ;;  %s1041_s17 = sadd.s32 1, %s991_s15   ;;  %s991_s15 = sphi %s1025_s15, %s1250_s15   ;;  %s987_s14 = sphi %s1023_s14, %s1249_s14   ;;  %s983_s13 = sphi %s1021_s13, %s1248_s13   ;;  %s979_s12 = sphi %s1019_s12, %s1247_s12  }
   0x7   : > { %s24_s18 = ssub.s32 %s991_s15, %s1041_s17  ;;  %s27_s19 = sadd.s32 1, %s987_s14 }
   0x8   : > { %p25_p0 = scmp.eq.s32.totalorder %s24_s18, 0  ;;  %p34_p1 = scmp.ne.s32.totalorder %s987_s14, %s983_s13 }
   0x9   : > { %p35_p2 = scmp.eq.s32.totalorder %s991_s15, 0  ;;  %p40_p3 = scmp.ne.s32.totalorder %s983_s13, %s979_s12 }
   0xa   : > { %s1051_s20 = scalar_select %p25_p0, %s987_s14, %s27_s19  }
   0xb   : > { %p36_p4 = por %p35_p2, %p34_p1  ;;  %p41_p5 = scmp.eq.s32.totalorder %s1038_s16, 0 }
   0xc   : > { %p788_p6 = scmp.lt.s32.totalorder %s991_s15, 2  ;;  %s1060_s22 = sand.u32 1, %s987_s14  }
   0xd   : > { %p1055_p7 = por %p41_p5, %p40_p3  ;;  %s675_s23 = sshll.u32 %s1060_s22, 4 }
   0xe   : > { %s727_s24 = sshll.u32 %s991_s15, 8  ;;  %s139_s28 = scalar_lea.vmem [#allocation2], %s675_s23 }
   0xf   : > { %s1241_s21 = scalar_select %p1055_p7, 1, 0 }
  0x10   : > { %s1067_s27 = scalar_lea.hbm %s1236_s0, %s727_s24  ;;  %s147_s29 = sshll.u32 %s139_s28, 4  ;;  %s1069_s29 = int_to_ptr.vmem [resolvable:$true] %s147_s29 }
  0x11   : > { %p1071_p8 = pnand %p788_p6, %p36_p4  ;;  %s136_s4 = scalar_lea.sflag [#allocation3], %s1060_s22 }
  0x12   : > { %s863_s5 = scalar_lea.hbm %s1067_s27, 256  ;;  %s868_s8 = scalar_lea.hbm %s1236_s0, 512 }
  0x13   : > { %p864_p11 = scmp.ne.s32.totalorder %s1067_s27, %s863_s5  ;;  %p865_p12 = pneg %p1071_p8 }
  0x14   : > { %p869_p1 = scmp.lt.u32.totalorder %s1067_s27, %s1236_s0  ;;  %p870_p2 = scmp.lt.u32.totalorder %s868_s8, %s863_s5 }
  0x15   : > { %p866_p13 = pnand %p865_p12, %p864_p11  ;;  %p872_p4 = scmp.lt.u32.totalorder %s863_s5, %s1067_s27 }
  0x16   : > { %p871_p3 = por %p870_p2, %p869_p1 }
  0x17   : > { %p867_p0 = pneg %p866_p13 }
  0x18   : > { %p873_p5 = por %p872_p4, %p871_p3 }
  0x1a   : > { %p874_p6 = pnand %p873_p5, %p867_p0 }
  0x1c   : > { %877 = shalt.err (!%p874_p6)
}
  0x1d   : > { %s878_s11 = scalar_lea.vmem %s1069_s29, 256  ;;  %s993_s12 = smov [#allocation2]  }
  0x1e   : > { %p879_p11 = scmp.ne.s32.totalorder %s1069_s29, %s878_s11  ;;  %s883_s18 = sshll.u32 %s993_s12, 4  ;;  %s884_s18 = int_to_ptr.vmem [resolvable:$false] %s883_s18 }
  0x1f   : > { %s885_s19 = scalar_lea.vmem %s884_s18, 512  ;;  %p886_p10 = scmp.lt.s32.totalorder %s1069_s29, %s884_s18 }
  0x20   : > { %p881_p13 = pnand %p879_p11, %p865_p12  ;;  %p887_p1 = scmp.lt.s32.totalorder %s885_s19, %s878_s11 }
  0x22   : > { %p882_p9 = pneg %p881_p13  ;;  %p888_p2 = por %p887_p1, %p886_p10 }
  0x24   : > { %p889_p3 = pnand %p888_p2, %p882_p9 }
  0x26   : > { %892 = shalt.err (!%p889_p3)
}
  0x27   : > { %784 = dma.hbm_to_vmem [thread:$0]  (!%p1071_p8), %s1067_s27, 256, %s1069_s29, %s136_s4  }
  0x28   : > { %p1243_p0 = scmp.lt.s32.totalorder %s991_s15, 3  ;;  %p1244_p4 = scmp.ge.s32.totalorder %s991_s15, 1 }
  0x29   : > { %s678_s24 = sshll.u32 %s1060_s22, 8  ;;  %s728_s25 = sshll.u32 %s991_s15, 12 }
  0x2a   : > { %p1107_p5 = pnand %p1244_p4, %p1243_p0  ;;  %s1116_s5 = scalar_lea.hbm %s1237_s1, %s728_s25 }
  0x2b   : > { %s158_s6 = scalar_lea.vmem [#allocation5], %s678_s24  ;;  %s155_s27 = scalar_lea.sflag [#allocation6], %s1060_s22 }
  0x2c   : > { %s165_s7 = sshll.u32 %s158_s6, 4  ;;  %s893_s29 = scalar_lea.hbm %s1116_s5, 4096  ;;  %s1118_s7 = int_to_ptr.vmem [resolvable:$true] %s165_s7 }
  0x2d   : > { %p894_p9 = scmp.ne.s32.totalorder %s1116_s5, %s893_s29  ;;  %s898_s8 = scalar_lea.hbm %s1237_s1, 8192 }
  0x2e   : > { %p899_p11 = scmp.lt.u32.totalorder %s1116_s5, %s1237_s1  ;;  %p900_p13 = scmp.lt.u32.totalorder %s898_s8, %s893_s29 }
  0x2f   : > { %p896_p10 = pnand %p894_p9, %p865_p12  ;;  %p902_p2 = scmp.lt.u32.totalorder %s893_s29, %s1116_s5 }
  0x30   : > { %p901_p1 = por %p900_p13, %p899_p11 }
  0x31   : > { %p897_p6 = pneg %p896_p10 }
  0x32   : > { %p903_p3 = por %p902_p2, %p901_p1 }
  0x34   : > { %p904_p0 = pnand %p903_p3, %p897_p6 }
  0x36   : > { %907 = shalt.err (!%p904_p0)
}
  0x37   : > { %s908_s11 = scalar_lea.vmem %s1118_s7, 4096  ;;  %s994_s12 = smov [#allocation5]  }
  0x38   : > { %p909_p4 = scmp.ne.s32.totalorder %s1118_s7, %s908_s11  ;;  %s913_s18 = sshll.u32 %s994_s12, 4  ;;  %s914_s18 = int_to_ptr.vmem [resolvable:$false] %s913_s18 }
  0x39   : > { %s915_s19 = scalar_lea.vmem %s914_s18, 8192  ;;  %p916_p7 = scmp.lt.s32.totalorder %s1118_s7, %s914_s18 }
  0x3a   : > { %p911_p9 = pnand %p909_p4, %p865_p12  ;;  %p917_p11 = scmp.lt.s32.totalorder %s915_s19, %s908_s11 }
  0x3c   : > { %p912_p10 = pneg %p911_p9  ;;  %p918_p13 = por %p917_p11, %p916_p7 }
  0x3e   : > { %p919_p1 = pnand %p918_p13, %p912_p10 }
  0x40   : > { %922 = shalt.err (!%p919_p1)
}
  0x41   : > { %s995_s24 = smov 64   ;;  %s996_s25 = smov 4  }
  0x42   : > { %787 = dma.hbm_to_vmem [thread:$0]  (!%p1071_p8), %s1116_s5, 4096, %s1118_s7, %s155_s27, %s995_s24, %s995_s24, %s996_s25  }
  0x43   : > { %177 = sbr.rel (%p1107_p5) target bundleno = 377 (0x179), region = 32  ;;  %s179_s26 = sand.u32 (!%p1107_p5), 1, %s983_s13  }
  0x44   : > { %s682_s28 = sshll.u32 (!%p1107_p5), %s179_s26, 4  ;;  %s180_s6 = scalar_lea.sflag (!%p1107_p5), [#allocation3], %s179_s26 }
  0x45   : > { %s1149_s29 = scalar_lea.vmem (!%p1107_p5), [#allocation2], %s682_s28  ;;  %p1246_p7 = scmp.ne.s32.totalorder (!%p1107_p5), %s1241_s21, 0 }
  0x4a   : > { %966 = dma.done.wait (%p1246_p7), %s180_s6, 256  }
  0x4b   : > { %968 = vsyncadd (%p1246_p7), %s180_s6, 4294967040  ;;  %s683_s15 = sshll.u32 %s179_s26, 8  ;;  %s189_s30 = scalar_lea.sflag [#allocation6], %s179_s26 }
  0x4c   : > { %s1155_s22 = scalar_lea.vmem [#allocation5], %s683_s15 }
  0x4d   : > { %970 = dma.done.wait (%p1246_p7), %s189_s30, 4096  }
  0x4e   : > { %972 = vsyncadd (%p1246_p7), %s189_s30, 4294963200  ;;  %p684_p8 = scmp.ne.s32.totalorder %s1038_s16, 0 }
  0x4f   : > { %v997_v0 = vmov (!%p684_p8), 0.0  }
  0x50   : > { %221 = sbr.rel (%p684_p8) target bundleno = 87 (0x57), region = 44  ;;  %222 = vst [vmem:[#allocation7] sm:$0xff] (!%p684_p8), %v997_v0 }
  0x57 PF: > { %v827_v1 = vld [vmem:[%s1155_s22 + $0x40] sm:$0xff]   ;;  %v831_v5 = vld [vmem:[%s1155_s22 + $0x48] sm:$0xff]   ;;  %v835_v9 = vld [vmem:[%s1155_s22 + $0x50] sm:$0xff]   ;;  %p721_p12 = scmp.ne.s32.totalorder %s1038_s16, 1 }
  0x58   : > { %v828_v2 = vld [vmem:[%s1155_s22 + $0xc0] sm:$0xff]   ;;  %729 = vmatprep.subr.bf16.mxu0 %v827_v1  ;;  %v832_v6 = vld [vmem:[%s1155_s22 + $0xc8] sm:$0xff]   ;;  %v836_v10 = vld [vmem:[%s1155_s22 + $0xd0] sm:$0xff]  }
  0x59   : > { %v829_v3 = vld [vmem:[%s1155_s22] sm:$0xff]   ;;  %751 = vmatprep.subr.bf16.mxu1 %v828_v2  ;;  %v833_v7 = vld [vmem:[%s1155_s22 + $0x8] sm:$0xff]   ;;  %v837_v11 = vld [vmem:[%s1155_s22 + $0x10] sm:$0xff]  }
  0x5a   : > { %v830_v4 = vld [vmem:[%s1155_s22 + $0x80] sm:$0xff]   ;;  %730 = vmatpush3.bf16.msra.mxu0 %v829_v3  ;;  %v834_v8 = vld [vmem:[%s1155_s22 + $0x88] sm:$0xff]   ;;  %v838_v12 = vld [vmem:[%s1155_s22 + $0x90] sm:$0xff]  }
  0x5b   : > { %752 = vmatpush3.bf16.msra.mxu1 %v830_v4  ;;  %731 = vmatprep.subr.bf16.mxu0 %v831_v5  ;;  %v839_v13 = vld [vmem:[%s1155_s22 + $0x58] sm:$0xff]   ;;  %v843_v17 = vld [vmem:[%s1155_s22 + $0x60] sm:$0xff]   ;;  %v847_v21 = vld [vmem:[%s1155_s22 + $0x68] sm:$0xff]  }
  0x5c   : > { %753 = vmatprep.subr.bf16.mxu1 %v832_v6  ;;  %v840_v14 = vld [vmem:[%s1155_s22 + $0xd8] sm:$0xff]   ;;  %v844_v18 = vld [vmem:[%s1155_s22 + $0xe0] sm:$0xff]   ;;  %v848_v22 = vld [vmem:[%s1155_s22 + $0xe8] sm:$0xff]  }
  0x5d   : > { %v841_v15 = vld [vmem:[%s1155_s22 + $0x18] sm:$0xff]   ;;  %v845_v19 = vld [vmem:[%s1155_s22 + $0x20] sm:$0xff]   ;;  %v849_v23 = vld [vmem:[%s1155_s22 + $0x28] sm:$0xff]  }
  0x5e   : > { %732 = vmatpush3.bf16.msra.mxu0 %v833_v7  ;;  %v842_v16 = vld [vmem:[%s1155_s22 + $0x98] sm:$0xff]   ;;  %v846_v20 = vld [vmem:[%s1155_s22 + $0xa0] sm:$0xff]   ;;  %v850_v24 = vld [vmem:[%s1155_s22 + $0xa8] sm:$0xff]  }
  0x5f   : > { %754 = vmatpush3.bf16.msra.mxu1 %v834_v8  ;;  %733 = vmatprep.subr.bf16.mxu0 %v835_v9  ;;  %v851_v25 = vld [vmem:[%s1155_s22 + $0x70] sm:$0xff]   ;;  %v855_v29 = vld [vmem:[%s1155_s22 + $0x78] sm:$0xff]   ;;  %v223_v47 = vld [vmem:[#allocation7] sm:$0xff] }
  0x60   : > { %755 = vmatprep.subr.bf16.mxu1 %v836_v10  ;;  %v852_v26 = vld [vmem:[%s1155_s22 + $0xf0] sm:$0xff]   ;;  %v856_v30 = vld [vmem:[%s1155_s22 + $0xf8] sm:$0xff]   ;;  %v722_v53 = vld [vmem:[%s1238_s2] ss:$0 sm:$0xff] (!%p721_p12) }
  0x61   : > { %v853_v27 = vld [vmem:[%s1155_s22 + $0x30] sm:$0xff]   ;;  %v857_v31 = vld [vmem:[%s1155_s22 + $0x38] sm:$0xff]  }
  0x62   : > { %734 = vmatpush3.bf16.msra.mxu0 %v837_v11  ;;  %v854_v28 = vld [vmem:[%s1155_s22 + $0xb0] sm:$0xff]   ;;  %v858_v32 = vld [vmem:[%s1155_s22 + $0xb8] sm:$0xff]  }
  0x63   : > { %756 = vmatpush3.bf16.msra.mxu1 %v838_v12  ;;  %735 = vmatprep.subr.bf16.mxu0 %v839_v13  ;;  %v224_v33 = vld [vmem:[%s1149_s29] sm:$0xff]  ;;  %v225_v34 = vld [vmem:[%s1149_s29 + $0x8] sm:$0xff] }
  0x64   : > { %757 = vmatprep.subr.bf16.mxu1 %v840_v14  ;;  %v685_v35 = vcombine.low %v224_v33, %v224_v33  ;;  %v686_v36 = vcombine.high %v224_v33, %v224_v33  ;;  %v687_v37 = vcombine.low %v225_v34, %v225_v34  ;;  %v688_v38 = vcombine.high %v225_v34, %v225_v34 }
  0x66   : > { %736 = vmatpush3.bf16.msra.mxu0 %v841_v15  ;;  %528 = vmatprep.mubr.bf16.mxu0 %v686_v36 }
  0x67   : > { %758 = vmatpush3.bf16.msra.mxu1 %v842_v16  ;;  %737 = vmatprep.subr.bf16.mxu0 %v843_v17 }
  0x68   : > { %759 = vmatprep.subr.bf16.mxu1 %v844_v18  ;;  %568 = vmatprep.mubr.bf16.mxu1 %v688_v38 }
  0x6a   : > { %738 = vmatpush3.bf16.msra.mxu0 %v845_v19 }
  0x6b   : > { %760 = vmatpush3.bf16.msra.mxu1 %v846_v20  ;;  %739 = vmatprep.subr.bf16.mxu0 %v847_v21 }
  0x6c   : > { %761 = vmatprep.subr.bf16.mxu1 %v848_v22 }
  0x6e   : > { %740 = vmatpush3.bf16.msra.mxu0 %v849_v23 }
  0x6f   : > { %762 = vmatpush3.bf16.msra.mxu1 %v850_v24  ;;  %741 = vmatprep.subr.bf16.mxu0 %v851_v25 }
  0x70   : > { %763 = vmatprep.subr.bf16.mxu1 %v852_v26 }
  0x72   : > { %742 = vmatpush3.bf16.msra.mxu0 %v853_v27 }
  0x73   : > { %764 = vmatpush3.bf16.msra.mxu1 %v854_v28  ;;  %743 = vmatprep.subr.bf16.mxu0 %v855_v29 }
  0x74   : > { %765 = vmatprep.subr.bf16.mxu1 %v856_v30 }
  0x76   : > { %744 = vmatpush3.bf16.msra.mxu0 %v857_v31 }
  0x77   : > { %766 = vmatpush3.bf16.msra.mxu1 %v858_v32 }
  0x79   : > { %529 = vmatmul.mubr.bf16.vlgmr.msra.gmra.mrb[0].mxu0 %v685_v35 }
  0x7a   : > { %569 = vmatmul.mubr.bf16.vlgmr.msra.gmra.mrb[0].mxu1 %v687_v37 }
 0x14c   : > { %v745_v39 = vpop.f32.mrb[0].mxu0 }
 0x14d   : > { %v767_v40 = vpop.f32.mrb[0].mxu1  ;;  %v746_v41 = vpop.f32.mrb[1].mxu0 }
 0x14e   : > { %v768_v42 = vpop.f32.mrb[1].mxu1  ;;  %v747_v43 = vadd.f32 %v746_v41, %v745_v39  ;;  %v748_v45 = vpop.f32.mrb[2].mxu0 }
 0x14f   : > { %v769_v44 = vadd.f32 %v768_v42, %v767_v40  ;;  %v770_v46 = vpop.f32.mrb[2].mxu1  ;;  %v749_v48 = vpop.f32.mrb[3].mxu0  ;;  %581 = sbr.rel (%p721_p12) target bundleno = 352 (0x160), region = 48 }
 0x150   : > { %v771_v49 = vpop.f32.mrb[3].mxu1 }
 0x151   : > { %v571_v50 = vadd.f32 %v769_v44, %v747_v43 }
 0x153   : > { %v576_v51 = vadd.f32 %v571_v50, %v223_v47 }
 0x155   : > { %577 = vst [vmem:[#allocation7] sm:$0xff] %v576_v51 }
 0x15c   : > { %v582_v52 = vld [vmem:[#allocation7] sm:$0xff] }
 0x15d   : > { %v590_v54 = vadd.f32 %v722_v53, %v582_v52 }
 0x15f   : > { %591 = vst [vmem:[#allocation7] sm:$0xff] %v590_v54 }
 0x160 PF: > { %p789_p5 = scmp.eq.s32.totalorder %s1038_s16, 1  ;;  %s998_s5 = smov [#allocation7]  }
 0x161   : > { %s599_s7 = sshll.u32 %s998_s5, 4  ;;  %s600_s7 = int_to_ptr.vmem [resolvable:$true] %s599_s7 }
 0x162   : > { %s923_s27 = scalar_lea.vmem %s600_s7, 128  ;;  %p930_p0 = scmp.lt.s32.totalorder %s600_s7, %s600_s7 }
 0x163   : > { %p924_p6 = scmp.ne.s32.totalorder %s600_s7, %s923_s27  ;;  %p931_p4 = scmp.lt.s32.totalorder %s923_s27, %s923_s27 }
 0x165   : > { %p925_p2 = pnand %p924_p6, %p789_p5  ;;  %p932_p9 = por %p931_p4, %p930_p0 }
 0x167   : > { %p926_p3 = pneg %p925_p2 }
 0x169   : > { %p933_p10 = pnand %p932_p9, %p926_p3 }
 0x16b   : > { %936 = shalt.err (!%p933_p10)
}
 0x16c   : > { %s937_s9 = scalar_lea.hbm %s1239_s3, 128 }
 0x16d   : > { %p938_p11 = scmp.ne.s32.totalorder %s1239_s3, %s937_s9  ;;  %p943_p7 = scmp.lt.u32.totalorder %s937_s9, %s1239_s3 }
 0x16f   : > { %p939_p13 = pnand %p938_p11, %p789_p5 }
 0x171   : > { %p940_p1 = pneg %p939_p13 }
 0x173   : > { %p945_p8 = pnand %p943_p7, %p940_p1 }
 0x175   : > { %948 = shalt.err (!%p945_p8)
}
 0x176   : > { %778 = dma.vmem_to_hbm [thread:$0]  (%p789_p5), %s600_s7, 128, %s1239_s3, [#allocation4]  }
 0x177   : > { %974 = dma.done.wait (%p789_p5), [#allocation4], 128  }
 0x178   : > { %976 = vsyncadd (%p789_p5), [#allocation4], 4294967168 }
 0x179 PF: > { %p17_p12 = scmp.ge.s32.totalorder %s1041_s17, 4   ;;  %s1247_s12 = smov %s983_s13 }
 0x17a   : > { %s1248_s13 = smov %s987_s14  ;;  %s1249_s14 = smov %s1051_s20 }
 0x17b   : > { %s1250_s15 = smov %s1041_s17  ;;  %19 = sbr.rel (!%p17_p12) target bundleno = 6 (0x6), region = 90 }
 0x182   :  { %612 = vsyncpa [#allocation3], 1 }
 0x183   :  { %614 = vsyncpa [#allocation3 + $0x1], 1 }
 0x184   :  { %615 = vsyncpa [#allocation6], 1 }
 0x185   :  { %617 = vsyncpa [#allocation6 + $0x1], 1 }
 0x186   :  { %618 = vsyncpa [#allocation4], 1 }
 0x187   :  { %620 = vsyncpa [#allocation4 + $0x1], 1 }

</bundles_post_ra>
